<compile_context>
chip_gen: v6e
topology: v6e:2x2x1
jax: 0.10.0
libtpu: 0.0.40
codegen_flags: <defaults>
</compile_context>

<pallas_src>
import functools
import math

import jax
import jax.numpy as jnp
from jax import lax
from jax.experimental import pallas as pl
from jax.experimental.pallas import tpu as pltpu


# Safe on v5e/v6e (128 MiB physical VMEM) and within v7x's 64 MiB per-TC VMEM.
_VMEM_LIMIT = 48 * 1024 * 1024


def _round_up(x, m):
    return ((x + m - 1) // m) * m


def _row_tile(dim, want):
    """Row (sublane-axis) tile: a multiple of 8, <= want, covering dim via cdiv+pad."""
    t = min(want, _round_up(dim, 8))
    return max(8, (t // 8) * 8)


def _pad_rows(a, rows):
    pad = rows - a.shape[0]
    if pad == 0:
        return a
    return jnp.pad(a, ((0, pad), (0, 0)))


# ---------------------------------------------------------------------------
# Linear:  out = x @ w_t + b      (w_t is the torch weight pre-transposed, (K, N))
# K and N are kept whole (single MXU dot per row tile; no K grid axis, no scratch).
# Fine for transformer channel sizes (C up to a few thousand).
# ---------------------------------------------------------------------------
def _linear_kernel(x_ref, w_ref, b_ref, o_ref):
    acc = jnp.dot(x_ref[...], w_ref[...], preferred_element_type=jnp.float32)
    o_ref[...] = (acc + b_ref[...].astype(jnp.float32)).astype(o_ref.dtype)


def linear(x, w_t, b, *, tm):
    M, K = x.shape
    K2, N = w_t.shape
    assert K == K2 and b.shape == (N,)
    assert M % tm == 0, (M, tm)

    return pl.pallas_call(
        _linear_kernel,
        out_shape=jax.ShapeDtypeStruct((M, N), x.dtype),
        grid=(M // tm,),
        in_specs=[
            pl.BlockSpec((tm, K), lambda i: (i, 0)),
            pl.BlockSpec((K, N), lambda i: (0, 0)),   # constant index -> VMEM-resident
            pl.BlockSpec((1, N), lambda i: (0, 0)),
        ],
        out_specs=pl.BlockSpec((tm, N), lambda i: (i, 0)),
        compiler_params=pltpu.CompilerParams(
            dimension_semantics=("parallel",),
            vmem_limit_bytes=_VMEM_LIMIT,
        ),
    )(x, w_t, b.reshape(1, N))


# ---------------------------------------------------------------------------
# Flash-style cross attention fused with the output projection.
#   q  : (Lq, C)    lane-dense (heads are column blocks, scale pre-folded into Wq)
#   kv : (Lk, 2C)   columns [0:C] = K, [C:2C] = V (read via BlockSpec column blocks)
#   out: (Lq, C)    = softmax(q k^T) v  @ Wp + bp   (lane-dense (tq, C) stores)
# The key axis is streamed with an online softmax; per-head stats live in VMEM scratch.
# ---------------------------------------------------------------------------
def _attn_kernel(q_ref, k_ref, v_ref, wp_ref, bp_ref, o_ref,
                 m_sc, l_sc, acc_sc, *, num_heads, head_dim, tkv, lk_valid):
    kv_i = pl.program_id(1)

    @pl.when(kv_i == 0)
    def _():
        m_sc[...] = jnp.full_like(m_sc, -jnp.inf)
        l_sc[...] = jnp.zeros_like(l_sc)
        acc_sc[...] = jnp.zeros_like(acc_sc)

    # Additive key-padding mask; only emitted when Lk required padding.
    neg = None
    if lk_valid is not None:
        kpos = kv_i * tkv + lax.broadcasted_iota(jnp.int32, (1, tkv), 1)
        neg = jnp.where(kpos < lk_valid, 0.0, -1e30).astype(jnp.float32)

    for h in range(num_heads):
        sl = slice(h * head_dim, (h + 1) * head_dim)
        qh = q_ref[:, sl]                       # (tq, d)  native dtype
        kh = k_ref[:, sl]                       # (tkv, d)
        vh = v_ref[:, sl]                       # (tkv, d)

        s = jnp.einsum("qd,kd->qk", qh, kh,
                       preferred_element_type=jnp.float32)       # (tq, tkv) f32
        if neg is not None:
            s = s + neg

        m_prev = m_sc[h]                                          # (tq, 1)
        m_new = jnp.maximum(m_prev, s.max(axis=-1, keepdims=True))
        alpha = jnp.exp(m_prev - m_new)
        p = jnp.exp(s - m_new)                                    # (tq, tkv) f32

        l_sc[h] = alpha * l_sc[h] + p.sum(axis=-1, keepdims=True)
        pv = jnp.dot(p.astype(vh.dtype), vh,
                     preferred_element_type=jnp.float32)          # (tq, d)
        acc_sc[:, sl] = alpha * acc_sc[:, sl] + pv
        m_sc[h] = m_new

    @pl.when(kv_i == pl.num_programs(1) - 1)
    def _():
        # Normalize per head (approx reciprocal -> EUP), then fuse the output proj.
        for h in range(num_heads):
            sl = slice(h * head_dim, (h + 1) * head_dim)
            acc_sc[:, sl] = acc_sc[:, sl] * pl.reciprocal(l_sc[h], approx=True)
        o = acc_sc[...].astype(wp_ref.dtype)                      # (tq, C) lane-dense
        out = jnp.dot(o, wp_ref[...], preferred_element_type=jnp.float32)
        o_ref[...] = (out + bp_ref[...].astype(jnp.float32)).astype(o_ref.dtype)


def attention_with_proj(q2d, kv2d, wp_t, bp, *, num_heads, tq, tkv, lk_valid):
    Lq, C = q2d.shape
    Lk, C2 = kv2d.shape
    assert C2 == 2 * C and C % num_heads == 0
    assert Lq % tq == 0 and Lk % tkv == 0
    d = C // num_heads

    # Only pass a mask bound when padding actually exists.
    lk_mask = None if lk_valid == Lk else lk_valid

    if C % 128 == 0:
        # Read K and V straight out of the fused (Lk, 2C) projection output:
        # column-block 0 -> K, column-block 1 -> V.  No XLA slice/relayout.
        k_in, v_in = kv2d, kv2d
        k_spec = pl.BlockSpec((tkv, C), lambda qi, ki: (ki, 0))
        v_spec = pl.BlockSpec((tkv, C), lambda qi, ki: (ki, 1))
    else:
        # Fallback for non-128-multiple C: one XLA split so the block last dim
        # equals the full array dim.
        k_in, v_in = kv2d[:, :C], kv2d[:, C:]
        k_spec = pl.BlockSpec((tkv, C), lambda qi, ki: (ki, 0))
        v_spec = pl.BlockSpec((tkv, C), lambda qi, ki: (ki, 0))

    kernel = functools.partial(_attn_kernel, num_heads=num_heads, head_dim=d,
                               tkv=tkv, lk_valid=lk_mask)

    return pl.pallas_call(
        kernel,
        out_shape=jax.ShapeDtypeStruct((Lq, C), q2d.dtype),
        grid=(Lq // tq, Lk // tkv),
        in_specs=[
            pl.BlockSpec((tq, C), lambda qi, ki: (qi, 0)),     # q (revisited per kv step)
            k_spec,                                            # K
            v_spec,                                            # V
            pl.BlockSpec((C, C), lambda qi, ki: (0, 0)),       # Wp (VMEM-resident)
            pl.BlockSpec((1, C), lambda qi, ki: (0, 0)),       # bp
        ],
        out_specs=pl.BlockSpec((tq, C), lambda qi, ki: (qi, 0)),
        scratch_shapes=[
            pltpu.VMEM((num_heads, tq, 1), jnp.float32),       # running max
            pltpu.VMEM((num_heads, tq, 1), jnp.float32),       # running denom
            pltpu.VMEM((tq, C), jnp.float32),                  # lane-dense accumulator
        ],
        compiler_params=pltpu.CompilerParams(
            dimension_semantics=("parallel", "arbitrary"),
            vmem_limit_bytes=_VMEM_LIMIT,
        ),
    )(q2d, k_in, v_in, wp_t, bp.reshape(1, C))


# ---------------------------------------------------------------------------
# Full module forward
# ---------------------------------------------------------------------------
def multi_head_v2t_cross_attention(x, cond, params, num_heads,
                                   *, tile_q=512, tile_kv=1024):
    """x: (B, M, C), cond: (B, N, C) -> (B, M, C).  mask=None path (full attention over
    the flattened B*N keys, matching the PyTorch forward)."""
    # TODO(synk): xformers BlockDiagonalMask (mask != None) path not implemented.
    # TODO(synk): attn_drop / proj_drop are identity (inference / p=0).
    B, M, C = x.shape
    Bc, N, Cc = cond.shape
    assert Bc == B and Cc == C and C % num_heads == 0
    d = C // num_heads
    Lq, Lk = B * M, B * N

    # Row tiles chosen once and shared between projections and attention; rows are
    # zero-padded to a tile multiple (padded keys are masked inside the kernel).
    tq = _row_tile(Lq, tile_q)
    tkv = _row_tile(Lk, tile_kv)
    Lqp = _round_up(Lq, tq)
    Lkp = _round_up(Lk, tkv)

    xf = _pad_rows(x.reshape(Lq, C), Lqp)
    cf = _pad_rows(cond.reshape(Lk, C), Lkp)

    # Fold the 1/sqrt(d) softmax scale into the Q projection (zero in-kernel cost).
    scale = 1.0 / math.sqrt(d)
    wq_t = params["wq_t"] * scale
    bq = params["bq"] * scale

    q = linear(xf, wq_t, bq, tm=tq)                          # (Lqp, C)   lane-dense
    kv = linear(cf, params["wkv_t"], params["bkv"], tm=tkv)  # (Lkp, 2C)  K | V columns

    out = attention_with_proj(q, kv, params["wp_t"], params["bp"],
                              num_heads=num_heads, tq=tq, tkv=tkv, lk_valid=Lk)
    return out[:Lq].reshape(B, M, C)


# ---------------------------------------------------------------------------
# Pure-JAX reference mirroring the PyTorch forward (mask=None)
# ---------------------------------------------------------------------------
def _reference(x, cond, params, num_heads):
    B, M, C = x.shape
    _, N, _ = cond.shape
    d = C // num_heads
    Lq, Lk = B * M, B * N

    q = (x.reshape(Lq, C) @ params["wq_t"] + params["bq"]).reshape(1, Lq, num_heads, d)
    kv = (cond.reshape(Lk, C) @ params["wkv_t"] + params["bkv"]).reshape(1, Lk, 2, num_heads, d)
    k, v = kv[:, :, 0], kv[:, :, 1]

    scale = 1.0 / math.sqrt(d)
    logits = jnp.einsum("bqhd,bkhd->bhqk", q, k) * scale
    p = jax.nn.softmax(logits, axis=-1)
    o = jnp.einsum("bhqk,bkhd->bqhd", p, v).reshape(B, M, C)
    return o @ params["wp_t"] + params["bp"]


if __name__ == "__main__":
    # Small config consistent with the module: d_model=128, num_heads=4 (head_dim=32),
    # batch=2, query seq=8, cond seq=8.
    B, M, N = 2, 8, 8
    C, num_heads = 128, 4

    key = jax.random.PRNGKey(0)
    kx, kc, k1, k2, k3, k4, k5, k6 = jax.random.split(key, 8)

    x = jax.random.normal(kx, (B, M, C), dtype=jnp.float32)
    cond = jax.random.normal(kc, (B, N, C), dtype=jnp.float32)

    s = 1.0 / math.sqrt(C)
    params = {
        # torch Linear weights are (out, in); stored pre-transposed as (in, out)
        "wq_t": jax.random.normal(k1, (C, C), dtype=jnp.float32) * s,
        "bq": jax.random.normal(k2, (C,), dtype=jnp.float32) * 0.01,
        "wkv_t": jax.random.normal(k3, (C, 2 * C), dtype=jnp.float32) * s,
        "bkv": jax.random.normal(k4, (2 * C,), dtype=jnp.float32) * 0.01,
        "wp_t": jax.random.normal(k5, (C, C), dtype=jnp.float32) * s,
        "bp": jax.random.normal(k6, (C,), dtype=jnp.float32) * 0.01,
    }

    out = multi_head_v2t_cross_attention(x, cond, params, num_heads)
    out = jax.block_until_ready(out)

    ref = _reference(x, cond, params, num_heads)
    assert out.shape == (B, M, C), out.shape
    # Tolerance loosened slightly for pl.reciprocal(approx=True) in the softmax denom.
    assert jnp.allclose(out, ref, atol=1e-2, rtol=1e-2), "mismatch vs reference"

    print("KERNEL_OK")
</pallas_src>

<mosaic_0001>
module attributes {stable_mosaic.version = 11 : i64} {
  func.func @_linear_kernel(%arg0: i32, %arg1: memref<16x128xf32, #tpu.memory_space<vmem>>, %arg2: memref<128x128xf32, #tpu.memory_space<vmem>>, %arg3: memref<1x128xf32, #tpu.memory_space<vmem>>, %arg4: memref<16x128xf32, #tpu.memory_space<vmem>>) attributes {dimension_semantics = [#tpu.dimension_semantics<parallel>], iteration_bounds = array<i64: 1>, scalar_prefetch = 0 : i64, scratch_operands = 0 : i64, tpu.core_type = #tpu.core_type<tc>, window_params = [{transform_indices = @transform_0, window_bounds = array<i64: 16, 128>}, {pipeline_mode = #tpu.pipeline_mode<synchronous>, transform_indices = @transform_1, window_bounds = array<i64: 128, 128>}, {pipeline_mode = #tpu.pipeline_mode<synchronous>, transform_indices = @transform_2, window_bounds = array<i64: 1, 128>}, {transform_indices = @transform_3, window_bounds = array<i64: 16, 128>}]} {
    %c0 = arith.constant 0 : index
    %c0_0 = arith.constant 0 : index
    %0 = vector.load %arg1[%c0, %c0_0] : memref<16x128xf32, #tpu.memory_space<vmem>>, vector<16x128xf32>
    %c0_1 = arith.constant 0 : index
    %c0_2 = arith.constant 0 : index
    %1 = vector.load %arg2[%c0_1, %c0_2] : memref<128x128xf32, #tpu.memory_space<vmem>>, vector<128x128xf32>
    %cst = arith.constant dense<0.000000e+00> : vector<16x128xf32>
    %2 = tpu.matmul %0, %1, %cst {dimension_numbers = #tpu.dot_dimension_numbers<[1], [0], [0], [1], [0, 0, 1, 1], [], []>} : vector<16x128xf32>, vector<128x128xf32>, vector<16x128xf32> -> vector<16x128xf32>
    %c0_3 = arith.constant 0 : index
    %c0_4 = arith.constant 0 : index
    %3 = vector.load %arg3[%c0_3, %c0_4] : memref<1x128xf32, #tpu.memory_space<vmem>>, vector<1x128xf32>
    %4 = vector.broadcast %3 : vector<1x128xf32> to vector<16x128xf32>
    %5 = arith.addf %2, %4 : vector<16x128xf32>
    %c0_5 = arith.constant 0 : index
    %c0_6 = arith.constant 0 : index
    %6 = vector.load %arg4[%c0_5, %c0_6] : memref<16x128xf32, #tpu.memory_space<vmem>>, vector<16x128xf32>
    tpu.vector_store %arg4[%c0_5, %c0_6], %5 {strides = array<i32>} : memref<16x128xf32, #tpu.memory_space<vmem>>, vector<16x128xf32>,
    return
  }
  func.func @transform_0(%arg0: i32) -> (i32, i32) {
    %c0_i32 = arith.constant 0 : i32
    %c0_i32_0 = arith.constant 0 : i32
    return %arg0, %c0_i32 : i32, i32
  }
  func.func @transform_1(%arg0: i32) -> (i32, i32) {
    %c0_i32 = arith.constant 0 : i32
    %c0_i32_0 = arith.constant 0 : i32
    %c0_i32_1 = arith.constant 0 : i32
    return %c0_i32, %c0_i32_0 : i32, i32
  }
  func.func @transform_2(%arg0: i32) -> (i32, i32) {
    %c0_i32 = arith.constant 0 : i32
    %c0_i32_0 = arith.constant 0 : i32
    %c0_i32_1 = arith.constant 0 : i32
    return %c0_i32, %c0_i32_0 : i32, i32
  }
  func.func @transform_3(%arg0: i32) -> (i32, i32) {
    %c0_i32 = arith.constant 0 : i32
    %c0_i32_0 = arith.constant 0 : i32
    return %arg0, %c0_i32 : i32, i32
  }
}

</mosaic_0001>

<bundles_post_ra>
// kernel: tpu_custom_call.1
= control target key start
LH: loop header
LB: loop body
LE: loop exit
PB: predicated region body
PF: predicated region fallthrough
CT: control target
= control target key end

     0   :  { %8 = vsyncpa [#allocation3], 0  ;;  %s334_s0 = inlined_call_operand.hbm [shape: f32[16,128], index: 0, kind: input, shape index: {}]   ;;  %s335_s1 = inlined_call_operand.hbm [shape: f32[128,128], index: 1, kind: input, shape index: {}]   ;;  %s336_s2 = inlined_call_operand.vmem [shape: f32[1,128], index: 2, kind: input, shape index: {}]   ;;  %s337_s3 = inlined_call_operand.hbm [shape: f32[16,128], index: 3, kind: output, shape index: {}]  }
   0x1   :  { %9 = vsyncpa [#allocation6], 0 }
   0x2   :  { %10 = vsyncpa [#allocation4], 0  ;;  %s288_s12 = smov [#allocation2]  }
   0x3   :  { %s16_s13 = sshll.u32 %s288_s12, 4  ;;  %s17_s13 = int_to_ptr.vmem [resolvable:$true] %s16_s13 }
   0x4   :  { %s230_s14 = scalar_lea.vmem %s17_s13, 256  ;;  %p235_p1 = scmp.lt.s32.totalorder %s17_s13, %s17_s13 }
   0x5   :  { %p231_p0 = scmp.ne.s32.totalorder %s17_s13, %s230_s14  ;;  %p236_p2 = scmp.lt.s32.totalorder %s230_s14, %s230_s14 }
   0x7   :  { %p237_p3 = por %p236_p2, %p235_p1 }
   0x9   :  { %p238_p4 = pnand %p237_p3, %p231_p0 }
   0xb   :  { %241 = shalt.err (!%p238_p4)
}
   0xc   :  { %s289_s15 = smov 128   ;;  %s290_s16 = smov 8  }
   0xd   :  { %22 = dma.hbm_to_vmem [thread:$0]  %s334_s0, 256, %s17_s13, [#allocation3], %s289_s15, %s289_s15, %s290_s16  }
   0xe   :  { %s291_s19 = smov [#allocation5]  }
   0xf   :  { %s28_s20 = sshll.u32 %s291_s19, 4  ;;  %s29_s20 = int_to_ptr.vmem [resolvable:$true] %s28_s20 }
  0x10   :  { %s250_s21 = scalar_lea.vmem %s29_s20, 2048  ;;  %p255_p6 = scmp.lt.s32.totalorder %s29_s20, %s29_s20 }
  0x11   :  { %p251_p5 = scmp.ne.s32.totalorder %s29_s20, %s250_s21  ;;  %p256_p7 = scmp.lt.s32.totalorder %s250_s21, %s250_s21 }
  0x13   :  { %p257_p8 = por %p256_p7, %p255_p6 }
  0x15   :  { %p258_p9 = pnand %p257_p8, %p251_p5 }
  0x17   :  { %261 = shalt.err (!%p258_p9)
}
  0x18   :  { %34 = dma.hbm_to_vmem [thread:$0]  %s335_s1, 2048, %s29_s20, [#allocation6], %s289_s15, %s289_s15, %s290_s16  }
  0x19   :  { %282 = dma.done.wait [#allocation3], 256  }
  0x1a   :  { %283 = vsyncadd [#allocation3], 4294967040 }
  0x1b   :  { %284 = dma.done.wait [#allocation6], 2048  }
  0x1c   :  { %285 = vsyncadd [#allocation6], 4294965248  ;;  %v60_v0 = vld [vmem:[#allocation5 + $0x78] sm:$0xff]  ;;  %v59_v1 = vld [vmem:[#allocation5 + $0x70] sm:$0xff]  ;;  %s292_s24 = smov [#allocation7]  }
  0x1d   :  { %182 = vmatprep.subr.mxu0 %v60_v0  ;;  %v58_v2 = vld [vmem:[#allocation5 + $0x68] sm:$0xff]  ;;  %v57_v3 = vld [vmem:[#allocation5 + $0x60] sm:$0xff]  ;;  %v43_v4 = vld [vmem:[#allocation2] sm:$0xff]  ;;  %s150_s25 = sshll.u32 %s292_s24, 4  ;;  %s151_s25 = int_to_ptr.vmem [resolvable:$true] %s150_s25 }
  0x1e   :  { %183 = vmatpush3.msra.mxu0 %v60_v0  ;;  %v56_v5 = vld [vmem:[#allocation5 + $0x58] sm:$0xff]  ;;  %214 = vmatprep.mubr.f32.mxu0 %v43_v4  ;;  %v55_v6 = vld [vmem:[#allocation5 + $0x50] sm:$0xff]  ;;  %v54_v7 = vld [vmem:[#allocation5 + $0x48] sm:$0xff]  ;;  %s262_s26 = scalar_lea.vmem %s151_s25, 256  ;;  %p267_p11 = scmp.lt.s32.totalorder %s151_s25, %s151_s25 }
  0x1f   :  { %184 = vmatprep.subr.mxu0 %v59_v1  ;;  %v53_v8 = vld [vmem:[#allocation5 + $0x40] sm:$0xff]  ;;  %v52_v9 = vld [vmem:[#allocation5 + $0x38] sm:$0xff]  ;;  %v51_v10 = vld [vmem:[#allocation5 + $0x30] sm:$0xff]  ;;  %p263_p10 = scmp.ne.s32.totalorder %s151_s25, %s262_s26  ;;  %p268_p12 = scmp.lt.s32.totalorder %s262_s26, %s262_s26 }
  0x20   :  { %185 = vmatpush3.msra.mxu0 %v59_v1  ;;  %v50_v11 = vld [vmem:[#allocation5 + $0x28] sm:$0xff]  ;;  %v49_v12 = vld [vmem:[#allocation5 + $0x20] sm:$0xff]  ;;  %v48_v13 = vld [vmem:[#allocation5 + $0x18] sm:$0xff] }
  0x21   :  { %186 = vmatprep.subr.mxu0 %v58_v2  ;;  %v47_v14 = vld [vmem:[#allocation5 + $0x10] sm:$0xff]  ;;  %v46_v15 = vld [vmem:[#allocation5 + $0x8] sm:$0xff]  ;;  %v45_v16 = vld [vmem:[#allocation5] sm:$0xff]  ;;  %p269_p13 = por %p268_p12, %p267_p11 }
  0x22   :  { %187 = vmatpush3.msra.mxu0 %v58_v2  ;;  %v44_v17 = vld [vmem:[#allocation2 + $0x8] sm:$0xff]  ;;  %v163_v18 = vld [vmem:[%s336_s2] ss:$0 sm:$0xff] }
  0x23   :  { %188 = vmatprep.subr.mxu0 %v57_v3  ;;  %p270_p0 = pnand %p269_p13, %p263_p10 }
  0x24   :  { %189 = vmatpush3.msra.mxu0 %v57_v3 }
  0x25   :  { %190 = vmatprep.subr.mxu0 %v56_v5 }
  0x26   :  { %191 = vmatpush3.msra.mxu0 %v56_v5 }
  0x27   :  { %192 = vmatprep.subr.mxu0 %v55_v6 }
  0x28   :  { %193 = vmatpush3.msra.mxu0 %v55_v6 }
  0x29   :  { %194 = vmatprep.subr.mxu0 %v54_v7 }
  0x2a   :  { %195 = vmatpush3.msra.mxu0 %v54_v7 }
  0x2b   :  { %196 = vmatprep.subr.mxu0 %v53_v8 }
  0x2c   :  { %197 = vmatpush3.msra.mxu0 %v53_v8 }
  0x2d   :  { %198 = vmatprep.subr.mxu0 %v52_v9 }
  0x2e   :  { %199 = vmatpush3.msra.mxu0 %v52_v9 }
  0x2f   :  { %200 = vmatprep.subr.mxu0 %v51_v10 }
  0x30   :  { %201 = vmatpush3.msra.mxu0 %v51_v10 }
  0x31   :  { %202 = vmatprep.subr.mxu0 %v50_v11 }
  0x32   :  { %203 = vmatpush3.msra.mxu0 %v50_v11 }
  0x33   :  { %204 = vmatprep.subr.mxu0 %v49_v12 }
  0x34   :  { %205 = vmatpush3.msra.mxu0 %v49_v12 }
  0x35   :  { %206 = vmatprep.subr.mxu0 %v48_v13 }
  0x36   :  { %207 = vmatpush3.msra.mxu0 %v48_v13 }
  0x37   :  { %208 = vmatprep.subr.mxu0 %v47_v14 }
  0x38   :  { %209 = vmatpush3.msra.mxu0 %v47_v14 }
  0x39   :  { %210 = vmatprep.subr.mxu0 %v46_v15 }
  0x3a   :  { %211 = vmatpush3.msra.mxu0 %v46_v15 }
  0x3b   :  { %212 = vmatprep.subr.mxu0 %v45_v16 }
  0x3c   :  { %213 = vmatpush3.msra.mxu0 %v45_v16 }
  0x3d   :  { %215 = vmatmul.mubr.f32.vlgmr.msra.gmra.mxu0 %v44_v17 }
  0xfd   :  { %v216_v19 = vpop.f32.mrf.mxu0 }
  0xfe   :  { %v140_v20 = vadd.f32 %v216_v19, %v163_v18 }
  0xff   :  { %v134_v21 = vpop.f32.mrf.mxu0 }
 0x100   :  { %144 = vst [vmem:[#allocation7 + $0x8] sm:$0xff] %v140_v20  ;;  %v135_v22 = vadd.f32 %v163_v18, %v134_v21 }
 0x102   :  { %143 = vst [vmem:[#allocation7] sm:$0xff] %v135_v22 }
 0x103   :  { %273 = shalt.err (!%p270_p0)
}
 0x104   :  { %156 = dma.vmem_to_hbm [thread:$0]  %s151_s25, 256, %s337_s3, [#allocation4], %s289_s15, %s289_s15, %s290_s16  }
 0x105   :  { %286 = dma.done.wait [#allocation4], 256  }
 0x106   :  { %287 = vsyncadd [#allocation4], 4294967040 }
 0x107   :  { %160 = vsyncpa [#allocation3], 1 }
 0x108   :  { %161 = vsyncpa [#allocation6], 1 }
 0x109   :  { %162 = vsyncpa [#allocation4], 1 }

</bundles_post_ra>
